<compile_context>
chip_gen: v7x
topology: tpu7x:2x2x1
jax: 0.10.0
libtpu: 0.0.40
codegen_flags: <defaults>
</compile_context>

<pallas_src>
import functools

import jax
import jax.numpy as jnp
from jax.experimental import pallas as pl
from jax.experimental.pallas import tpu as pltpu

OUT_C = 256


def _round_up(x, m):
    return ((x + m - 1) // m) * m


def _vmem_limit_bytes():
    cap = 64 * 1024 * 1024
    try:
        cap = int(pltpu.get_tpu_info().vmem_capacity_bytes)
    except Exception:
        pass
    return int(min(cap * 0.85, 100 * 1024 * 1024))


def _choose_row_tile(h, wp_cols, c, vmem_limit):
    """Largest row tile (multiple of 8 rows) whose per-step VMEM footprint
    (f32 intermediates + tap slices + double-buffered output) fits a budget
    that also accounts for the VMEM-resident bf16 weights."""
    h8 = _round_up(h, 8)
    resident_w = 2 * (28 * c * OUT_C + 4 * OUT_C * OUT_C)      # bf16 weights
    budget = max(vmem_limit // 3 - resident_w, 1 << 20)
    best, th = 8, 8
    while th <= h8:
        m = th * wp_cols
        per_step = (6 * m * OUT_C * 4        # acc / z / b f32 intermediates
                    + 4 * m * c * 2          # live bf16 tap slices
                    + 2 * m * OUT_C * 4)     # double-buffered output block
        if per_step <= budget and m <= 4096:
            best = th
        th += 8
    return best


# ---------------------------------------------------------------------------
# Pallas kernels
# ---------------------------------------------------------------------------

def _aspp_fused_kernel(xp_ref, pb_ref, w0_ref, wd_ref, wp_ref,
                       bn_s_ref, bn_t_ref, pj_s_ref, pj_t_ref, o_ref,
                       *, th, wp_cols, pad, rates):
    """One (image, row-tile) step: all ASPP branches + 1x1 projection."""
    i = pl.program_id(1)
    row0 = i * th                                # first output row of the tile
    base = (row0 + pad + 1) * wp_cols            # flat offset of the centre tap
    m = th * wp_cols

    def tap(dr, dc):
        # Contiguous flat slice of the resident padded image: rows wrap into
        # the neighbouring padded row only at discarded halo columns.
        return xp_ref[0, pl.ds(base + dr * wp_cols + dc, m), :]    # (m, C) bf16

    # --- branch 0: 1x1 conv + BN + ReLU, immediately projected -------------
    b = jnp.dot(tap(0, 0), w0_ref[...], preferred_element_type=jnp.float32)
    b = jnp.maximum(b * bn_s_ref[0] + bn_t_ref[0], 0.0)
    acc = jnp.dot(b.astype(wp_ref.dtype), wp_ref[0],
                  preferred_element_type=jnp.float32)

    # --- branches 1..3: dilated 3x3 = 9 accumulating K=C matmuls -----------
    for j, d in enumerate(rates):
        z = None
        for kh in range(3):
            for kw in range(3):
                xt = tap((kh - 1) * d, (kw - 1) * d)
                t = jnp.dot(xt, wd_ref[j, kh * 3 + kw],
                            preferred_element_type=jnp.float32)
                z = t if z is None else z + t
        z = jnp.maximum(z * bn_s_ref[j + 1] + bn_t_ref[j + 1], 0.0)
        acc = acc + jnp.dot(z.astype(wp_ref.dtype), wp_ref[j + 1],
                            preferred_element_type=jnp.float32)

    # --- pooled branch: per-image constant contribution (rank-1 bias) ------
    acc = acc + pb_ref[0]

    # --- projection BN + ReLU (Dropout is identity in eval mode) -----------
    y = acc * pj_s_ref[...] + pj_t_ref[...]
    o_ref[0] = jnp.maximum(y, 0.0).astype(o_ref.dtype)


def _pool_branch_kernel(xp_ref, w4_ref, s4_ref, t4_ref, wp4_ref, o_ref,
                        *, inv_s):
    """Global average pool + pooled 1x1 conv + BN + ReLU + projection slice,
    producing a per-image additive bias for the fused projection."""
    pooled = jnp.sum(xp_ref[0].astype(jnp.float32), axis=0,
                     keepdims=True) * inv_s                         # (1, C)
    z = jnp.dot(pooled, w4_ref[...], preferred_element_type=jnp.float32)
    z = jnp.maximum(z * s4_ref[...] + t4_ref[...], 0.0)
    o_ref[0] = jnp.dot(z, wp4_ref[...], preferred_element_type=jnp.float32)


# ---------------------------------------------------------------------------
# pallas_call wrappers
# ---------------------------------------------------------------------------

def _aspp_fused_call(xp, pb, w0, wd, wp_main, bn_s, bn_t, pj_s, pj_t, *,
                     th, wp_cols, pad, rates, hc, vmem_limit):
    n, lp, c = xp.shape
    steps = hc // th
    m_total = n * hc * wp_cols
    flops = 2 * m_total * OUT_C * (28 * c + 4 * OUT_C)
    bytes_accessed = (2 * n * lp * c + 4 * m_total * OUT_C
                      + 2 * (28 * c * OUT_C + 4 * OUT_C * OUT_C)
                      + 4 * 10 * OUT_C)

    kernel = functools.partial(_aspp_fused_kernel, th=th, wp_cols=wp_cols,
                               pad=pad, rates=rates)
    return pl.pallas_call(
        kernel,
        out_shape=jax.ShapeDtypeStruct((n, hc * wp_cols, OUT_C), jnp.float32),
        grid_spec=pltpu.PrefetchScalarGridSpec(
            num_scalar_prefetch=0,
            grid=(n, steps),
            in_specs=[
                # padded image: constant over the row-tile axis -> DMA'd once
                # per image and kept VMEM-resident.
                pl.BlockSpec((1, lp, c), lambda b, i: (b, 0, 0)),
                pl.BlockSpec((1, 1, OUT_C), lambda b, i: (b, 0, 0)),   # pool bias
                # weights / affines: constant index maps -> VMEM-resident.
                pl.BlockSpec((c, OUT_C), lambda b, i: (0, 0)),
                pl.BlockSpec((3, 9, c, OUT_C), lambda b, i: (0, 0, 0, 0)),
                pl.BlockSpec((4, OUT_C, OUT_C), lambda b, i: (0, 0, 0)),
                pl.BlockSpec((4, 1, OUT_C), lambda b, i: (0, 0, 0)),
                pl.BlockSpec((4, 1, OUT_C), lambda b, i: (0, 0, 0)),
                pl.BlockSpec((1, OUT_C), lambda b, i: (0, 0)),
                pl.BlockSpec((1, OUT_C), lambda b, i: (0, 0)),
            ],
            out_specs=pl.BlockSpec((1, th * wp_cols, OUT_C),
                                   lambda b, i: (b, i, 0)),
        ),
        compiler_params=pltpu.CompilerParams(
            dimension_semantics=("parallel", "parallel"),
            vmem_limit_bytes=vmem_limit),
        cost_estimate=pl.CostEstimate(flops=flops, transcendentals=0,
                                      bytes_accessed=bytes_accessed),
    )(xp, pb, w0, wd, wp_main, bn_s, bn_t, pj_s, pj_t)


def _pool_branch_bias(xp, w4, s4, t4, wp_pool, *, inv_s, vmem_limit):
    n, lp, c = xp.shape
    return pl.pallas_call(
        functools.partial(_pool_branch_kernel, inv_s=inv_s),
        out_shape=jax.ShapeDtypeStruct((n, 1, OUT_C), jnp.float32),
        grid_spec=pltpu.PrefetchScalarGridSpec(
            num_scalar_prefetch=0,
            grid=(n,),
            in_specs=[
                pl.BlockSpec((1, lp, c), lambda b: (b, 0, 0)),
                pl.BlockSpec((c, OUT_C), lambda b: (0, 0)),
                pl.BlockSpec((1, OUT_C), lambda b: (0, 0)),
                pl.BlockSpec((1, OUT_C), lambda b: (0, 0)),
                pl.BlockSpec((OUT_C, OUT_C), lambda b: (0, 0)),
            ],
            out_specs=pl.BlockSpec((1, 1, OUT_C), lambda b: (b, 0, 0)),
        ),
        compiler_params=pltpu.CompilerParams(
            dimension_semantics=("arbitrary",),
            vmem_limit_bytes=vmem_limit),
    )(xp, w4, s4, t4, wp_pool)


# ---------------------------------------------------------------------------
# Parameters (inference-folded BatchNorm) and forward pass
# ---------------------------------------------------------------------------

def _bn_scale_shift(key, c, eps=1e-5):
    k1, k2, k3, k4 = jax.random.split(key, 4)
    gamma = 1.0 + 0.1 * jax.random.normal(k1, (c,), jnp.float32)
    beta = 0.1 * jax.random.normal(k2, (c,), jnp.float32)
    running_mean = 0.1 * jax.random.normal(k3, (c,), jnp.float32)
    running_var = 1.0 + 0.1 * jax.random.uniform(k4, (c,), jnp.float32)
    scale = gamma / jnp.sqrt(running_var + eps)
    shift = beta - running_mean * scale
    return scale, shift                                  # each (c,)


def init_aspp_params(key, in_channels, atrous_rates):
    keys = jax.random.split(key, 12)
    p = {"rates": tuple(atrous_rates)}

    def conv_w(k, cout, cin, ksize):
        fan_in = cin * ksize * ksize
        return (jax.random.normal(k, (cout, cin, ksize, ksize), jnp.float32)
                / jnp.sqrt(float(fan_in)))

    p["b0_w"] = conv_w(keys[0], OUT_C, in_channels, 1)
    p["b0_bn"] = _bn_scale_shift(keys[1], OUT_C)
    for bi in range(3):
        p[f"b{bi+1}_w"] = conv_w(keys[2 + 2 * bi], OUT_C, in_channels, 3)
        p[f"b{bi+1}_bn"] = _bn_scale_shift(keys[3 + 2 * bi], OUT_C)
    p["b4_w"] = conv_w(keys[8], OUT_C, in_channels, 1)
    p["b4_bn"] = _bn_scale_shift(keys[9], OUT_C)
    p["proj_w"] = conv_w(keys[10], OUT_C, 5 * OUT_C, 1)
    p["proj_bn"] = _bn_scale_shift(keys[11], OUT_C)
    return p


def aspp_forward(x_nchw, params):
    """ASPP forward. Input (N, C_in, H, W) -> output (N, 256, H, W)."""
    n, c, h, w = x_nchw.shape
    rates = params["rates"]
    p = max(rates)
    wp_cols = w + 2 * p

    vmem_limit = _vmem_limit_bytes()
    th = _choose_row_tile(h, wp_cols, c, vmem_limit)
    hc = _round_up(h, th)

    # ---- pad once: P halo + 1 guard row top/bottom + bottom tile padding ---
    x = jnp.transpose(x_nchw, (0, 2, 3, 1)).astype(jnp.float32)       # NHWC
    xpad = jnp.pad(x, ((0, 0), (p + 1, p + 1 + hc - h), (p, p), (0, 0)))
    lp = (hc + 2 * p + 2) * wp_cols
    xp = xpad.reshape(n, lp, c).astype(jnp.bfloat16)                  # (N,Lp,C)

    # ---- weights in matmul-ready layout (bf16 for MXU operands) -----------
    w0 = params["b0_w"][:, :, 0, 0].T.astype(jnp.bfloat16)            # (C,256)
    wd = jnp.stack([
        jnp.stack([params[f"b{bi+1}_w"][:, :, kh, kw].T
                   for kh in range(3) for kw in range(3)], axis=0)
        for bi in range(3)], axis=0).astype(jnp.bfloat16)             # (3,9,C,256)
    w4 = params["b4_w"][:, :, 0, 0].T                                 # (C,256) f32
    wproj = params["proj_w"][:, :, 0, 0].T                            # (1280,256)
    wp_main = wproj[:4 * OUT_C].reshape(4, OUT_C, OUT_C).astype(jnp.bfloat16)
    wp_pool = wproj[4 * OUT_C:]                                       # f32

    bn_s = jnp.stack([params["b0_bn"][0], params["b1_bn"][0],
                      params["b2_bn"][0], params["b3_bn"][0]])[:, None, :]
    bn_t = jnp.stack([params["b0_bn"][1], params["b1_bn"][1],
                      params["b2_bn"][1], params["b3_bn"][1]])[:, None, :]
    s4, t4 = params["b4_bn"]
    pj_s, pj_t = params["proj_bn"]

    # ---- pooled branch -> per-image projection bias ------------------------
    # (bilinear upsampling of the 1x1 pooled map with align_corners=False is a
    #  constant broadcast, so its projection contribution is a per-image bias)
    pb = _pool_branch_bias(xp, w4, s4[None, :], t4[None, :], wp_pool,
                           inv_s=1.0 / float(h * w),
                           vmem_limit=vmem_limit)                     # (N,1,256)

    # ---- fused branches + projection (single pass over the resident image) -
    out = _aspp_fused_call(xp, pb, w0, wd, wp_main, bn_s, bn_t,
                           pj_s[None, :], pj_t[None, :],
                           th=th, wp_cols=wp_cols, pad=p, rates=rates,
                           hc=hc, vmem_limit=vmem_limit)   # (N, hc*wp_cols, 256)

    out = out.reshape(n, hc, wp_cols, OUT_C)[:, :h, p:p + w, :]
    return jnp.transpose(out, (0, 3, 1, 2))                           # NCHW


# ---------------------------------------------------------------------------

if __name__ == "__main__":
    key = jax.random.PRNGKey(0)
    k_x, k_p = jax.random.split(key)

    N, C_in, H, W = 2, 8, 16, 16
    atrous_rates = (1, 2, 3)

    x = jax.random.normal(k_x, (N, C_in, H, W), jnp.float32)
    params = init_aspp_params(k_p, C_in, atrous_rates)

    out = jax.block_until_ready(aspp_forward(x, params))

    assert out.shape == (N, 256, H, W), out.shape
    assert out.dtype == jnp.float32
    assert bool(jnp.all(jnp.isfinite(out)))
    assert bool(jnp.all(out >= 0.0))  # ReLU output

    print("KERNEL_OK")
</pallas_src>

<mosaic_0001>
module attributes {stable_mosaic.version = 11 : i64} {
  func.func @_pool_branch_kernel(%arg0: i32, %arg1: memref<1x528x8xbf16, #tpu.memory_space<vmem>>, %arg2: memref<8x256xf32, #tpu.memory_space<vmem>>, %arg3: memref<1x256xf32, #tpu.memory_space<vmem>>, %arg4: memref<1x256xf32, #tpu.memory_space<vmem>>, %arg5: memref<256x256xf32, #tpu.memory_space<vmem>>, %arg6: memref<1x1x256xf32, #tpu.memory_space<vmem>>) attributes {dimension_semantics = [#tpu.dimension_semantics<arbitrary>], iteration_bounds = array<i64: 2>, scalar_prefetch = 0 : i64, scratch_operands = 0 : i64, tpu.core_type = #tpu.core_type<tc>, window_params = [{transform_indices = @transform_0, window_bounds = array<i64: 1, 528, 8>}, {pipeline_mode = #tpu.pipeline_mode<synchronous>, transform_indices = @transform_1, window_bounds = array<i64: 8, 256>}, {pipeline_mode = #tpu.pipeline_mode<synchronous>, transform_indices = @transform_2, window_bounds = array<i64: 1, 256>}, {pipeline_mode = #tpu.pipeline_mode<synchronous>, transform_indices = @transform_3, window_bounds = array<i64: 1, 256>}, {pipeline_mode = #tpu.pipeline_mode<synchronous>, transform_indices = @transform_4, window_bounds = array<i64: 256, 256>}, {transform_indices = @transform_5, window_bounds = array<i64: 1, 1, 256>}]} {
    %c0 = arith.constant 0 : index
    %c0_0 = arith.constant 0 : index
    %c0_1 = arith.constant 0 : index
    %0 = vector.load %arg1[%c0, %c0_0, %c0_1] : memref<1x528x8xbf16, #tpu.memory_space<vmem>>, vector<1x528x8xbf16>
    %1 = vector.shape_cast %0 : vector<1x528x8xbf16> to vector<528x8xbf16>
    %2 = arith.extf %1 : vector<528x8xbf16> to vector<528x8xf32>
    %cst = arith.constant dense<0.000000e+00> : vector<8xf32>
    %3 = vector.multi_reduction <add>, %2, %cst [0] : vector<528x8xf32> to vector<8xf32>
    %4 = vector.shape_cast %3 : vector<8xf32> to vector<1x8xf32>
    %cst_2 = arith.constant 3.906250e-03 : f32
    %5 = vector.broadcast %cst_2 : f32 to vector<1x8xf32>
    %6 = arith.mulf %4, %5 : vector<1x8xf32>
    %c0_3 = arith.constant 0 : index
    %c0_4 = arith.constant 0 : index
    %7 = vector.load %arg2[%c0_3, %c0_4] : memref<8x256xf32, #tpu.memory_space<vmem>>, vector<8x256xf32>
    %cst_5 = arith.constant dense<0.000000e+00> : vector<1x256xf32>
    %8 = tpu.matmul %6, %7, %cst_5 {dimension_numbers = #tpu.dot_dimension_numbers<[1], [0], [0], [1], [0, 0, 1, 1], [], []>} : vector<1x8xf32>, vector<8x256xf32>, vector<1x256xf32> -> vector<1x256xf32>
    %c0_6 = arith.constant 0 : index
    %c0_7 = arith.constant 0 : index
    %9 = vector.load %arg3[%c0_6, %c0_7] : memref<1x256xf32, #tpu.memory_space<vmem>>, vector<1x256xf32>
    %10 = arith.mulf %8, %9 : vector<1x256xf32>
    %c0_8 = arith.constant 0 : index
    %c0_9 = arith.constant 0 : index
    %11 = vector.load %arg4[%c0_8, %c0_9] : memref<1x256xf32, #tpu.memory_space<vmem>>, vector<1x256xf32>
    %12 = arith.addf %10, %11 : vector<1x256xf32>
    %cst_10 = arith.constant 0.000000e+00 : f32
    %13 = vector.broadcast %cst_10 : f32 to vector<1x256xf32>
    %14 = arith.maximumf %12, %13 : vector<1x256xf32>
    %c0_11 = arith.constant 0 : index
    %c0_12 = arith.constant 0 : index
    %15 = vector.load %arg5[%c0_11, %c0_12] : memref<256x256xf32, #tpu.memory_space<vmem>>, vector<256x256xf32>
    %cst_13 = arith.constant dense<0.000000e+00> : vector<1x256xf32>
    %16 = tpu.matmul %14, %15, %cst_13 {dimension_numbers = #tpu.dot_dimension_numbers<[1], [0], [0], [1], [0, 0, 1, 1], [], []>} : vector<1x256xf32>, vector<256x256xf32>, vector<1x256xf32> -> vector<1x256xf32>
    %c0_14 = arith.constant 0 : index
    %c0_15 = arith.constant 0 : index
    %c0_16 = arith.constant 0 : index
    %17 = vector.load %arg6[%c0_14, %c0_15, %c0_16] : memref<1x1x256xf32, #tpu.memory_space<vmem>>, vector<1x1x256xf32>
    %18 = vector.shape_cast %17 : vector<1x1x256xf32> to vector<1x256xf32>
    %19 = vector.shape_cast %16 : vector<1x256xf32> to vector<1x1x256xf32>
    tpu.vector_store %arg6[%c0_14, %c0_15, %c0_16], %19 {strides = array<i32>} : memref<1x1x256xf32, #tpu.memory_space<vmem>>, vector<1x1x256xf32>,
    return
  }
  func.func @transform_0(%arg0: i32) -> (i32, i32, i32) {
    %c0_i32 = arith.constant 0 : i32
    %c0_i32_0 = arith.constant 0 : i32
    %c0_i32_1 = arith.constant 0 : i32
    return %arg0, %c0_i32, %c0_i32_0 : i32, i32, i32
  }
  func.func @transform_1(%arg0: i32) -> (i32, i32) {
    %c0_i32 = arith.constant 0 : i32
    %c0_i32_0 = arith.constant 0 : i32
    %c0_i32_1 = arith.constant 0 : i32
    return %c0_i32, %c0_i32_0 : i32, i32
  }
  func.func @transform_2(%arg0: i32) -> (i32, i32) {
    %c0_i32 = arith.constant 0 : i32
    %c0_i32_0 = arith.constant 0 : i32
    %c0_i32_1 = arith.constant 0 : i32
    return %c0_i32, %c0_i32_0 : i32, i32
  }
  func.func @transform_3(%arg0: i32) -> (i32, i32) {
    %c0_i32 = arith.constant 0 : i32
    %c0_i32_0 = arith.constant 0 : i32
    %c0_i32_1 = arith.constant 0 : i32
    return %c0_i32, %c0_i32_0 : i32, i32
  }
  func.func @transform_4(%arg0: i32) -> (i32, i32) {
    %c0_i32 = arith.constant 0 : i32
    %c0_i32_0 = arith.constant 0 : i32
    %c0_i32_1 = arith.constant 0 : i32
    return %c0_i32, %c0_i32_0 : i32, i32
  }
  func.func @transform_5(%arg0: i32) -> (i32, i32, i32) {
    %c0_i32 = arith.constant 0 : i32
    %c0_i32_0 = arith.constant 0 : i32
    %c0_i32_1 = arith.constant 0 : i32
    return %arg0, %c0_i32, %c0_i32_0 : i32, i32, i32
  }
}

</mosaic_0001>

<bundles_post_ra>
// kernel: tpu_custom_call.1
= control target key start
LH: loop header
LB: loop body
LE: loop exit
PB: predicated region body
PF: predicated region fallthrough
CT: control target
= control target key end

     0   :  { %10 = vsyncpa [#allocation3], 0  ;;  %s1618_s0 = inlined_call_operand.vmem [shape: bf16[2,528,8], index: 0, kind: input, shape index: {}]   ;;  %s1619_s1 = inlined_call_operand.vmem [shape: f32[8,256], index: 1, kind: input, shape index: {}]   ;;  %s1620_s2 = inlined_call_operand.vmem [shape: f32[1,256], index: 2, kind: input, shape index: {}]   ;;  %s1621_s3 = inlined_call_operand.vmem [shape: f32[1,256], index: 3, kind: input, shape index: {}]   ;;  %s1622_s4 = inlined_call_operand.vmem [shape: f32[256,256], index: 4, kind: input, shape index: {}]   ;;  %s1623_s5 = inlined_call_operand.hbm [shape: f32[2,1,256], index: 5, kind: output, shape index: {}]  }
   0x1   :  { %12 = vsyncpa [#allocation3 + $0x1], 0  ;;  %s1212_s18 = smov 0   ;;  %s1214_s19 = smov 0  }
   0x2   :  { %s1216_s20 = smov 0   ;;  %s1218_s21 = smov 0  }
   0x3 LB: > { %s1233_s22 = sadd.s32 4294967295, %s1177_s21   ;;  %s832_s23 = sadd.s32 4294967294, %s1177_s21   ;;  %s1177_s21 = sphi %s1218_s21, %s1629_s21   ;;  %s1173_s20 = sphi %s1216_s20, %s1628_s20   ;;  %s1169_s19 = sphi %s1214_s19, %s1627_s19   ;;  %s1165_s18 = sphi %s1212_s18, %s1626_s18  }
   0x4   : > { %s1237_s24 = sadd.s32 1, %s1177_s21   ;;  %s135_s25 = sadd.s32 1, %s1173_s20 }
   0x5   : > { %s132_s26 = ssub.s32 %s1177_s21, %s1237_s24  ;;  %p145_p0 = scmp.ne.s32.totalorder %s1173_s20, %s1169_s19 }
   0x6   : > { %p133_p1 = scmp.eq.s32.totalorder %s132_s26, 0  ;;  %p146_p2 = scmp.eq.s32.totalorder %s1233_s22, 1 }
   0x7   : > { %p151_p3 = scmp.ne.s32.totalorder %s1169_s19, %s1165_s18  ;;  %p152_p4 = scmp.eq.s32.totalorder %s832_s23, 1 }
   0x8   : > { %s1248_s27 = scalar_select %p133_p1, %s1173_s20, %s135_s25  }
   0x9   : > { %p1250_p5 = por %p146_p2, %p145_p0  ;;  %p1254_p6 = por %p152_p4, %p151_p3 }
   0xa   : > { %p835_p7 = scmp.ge.s32.totalorder %s1177_s21, 1  ;;  %p190_p8 = scmp.lt.s32.totalorder %s1177_s21, 3 }
   0xc   : > { %p191_p9 = pnand %p835_p7, %p190_p8 }
   0xd   : > { %v495_v0 = vld [vmem:[%s1619_s1 + $0x8] sm:$0xff] (!%p191_p9)  ;;  %v494_v1 = vld [vmem:[%s1619_s1] sm:$0xff] (!%p191_p9)  ;;  %v1179_v2 = vmov (!%p191_p9), 0.0   ;;  %p218_p10 = scmp.lt.s32.totalorder (!%p191_p9), %s1233_s22, 1  ;;  %vm355_vm0 = vcmask (!%p191_p9), 64512   ;;  %v603_v45 = vld [vmem:[%s1622_s4 + $0x18] sm:$0xff] (!%p191_p9) }
   0xe   : > { %194 = sbr.rel (%p191_p9) target bundleno = 627 (0x273), region = 40  ;;  %499 = vmatprep.subr.mxu0 (!%p191_p9), %v495_v0  ;;  %563 = vmatprep.mubr.f32.mxu0 (!%p191_p9), %v1179_v2  ;;  %v601_v44 = vld [vmem:[%s1622_s4 + $0x8] sm:$0xff] (!%p191_p9)  ;;  %v600_v46 = vld [vmem:[%s1622_s4] sm:$0xff] (!%p191_p9)  ;;  %v602_v49 = vld [vmem:[%s1622_s4 + $0x10] sm:$0xff] (!%p191_p9)  ;;  %s215_s8 = sand.u32 (!%p191_p9), 1, %s1169_s19  }
   0xf   : > { %500 = vmatpush1.msra.mxu0 (!%p191_p9), %v494_v1  ;;  %v605_v50 = vld [vmem:[%s1622_s4 + $0x28] sm:$0xff] (!%p191_p9)  ;;  %v1009_v52 = vpack.c.bf16 (!%p191_p9), %v603_v45, %v601_v44  ;;  %v1011_v53 = vpack.c.bf16 (!%p191_p9), %v602_v49, %v600_v46  ;;  %v607_v54 = vld [vmem:[%s1622_s4 + $0x38] sm:$0xff] (!%p191_p9)  ;;  %v604_v55 = vld [vmem:[%s1622_s4 + $0x20] sm:$0xff] (!%p191_p9)  ;;  %s759_s17 = scalar_lea.sflag (!%p191_p9), [#allocation3], %s215_s8 }
  0x10   : > { %v606_v56 = vld [vmem:[%s1622_s4 + $0x30] sm:$0xff] (!%p191_p9)  ;;  %v1013_v59 = vpack.c.bf16 (!%p191_p9), %v607_v54, %v605_v50  ;;  %v609_v60 = vld [vmem:[%s1622_s4 + $0x48] sm:$0xff] (!%p191_p9)  ;;  %v611_v61 = vld [vmem:[%s1622_s4 + $0x58] sm:$0xff] (!%p191_p9) }
  0x11   : > { %1010 = vmatprep.subr.bf16.mxu1 (!%p191_p9), %v1009_v52  ;;  %v1015_v2 = vpack.c.bf16 (!%p191_p9), %v606_v56, %v604_v55  ;;  %v620_v44 = vld [vmem:[%s1622_s4 + $0xa0] sm:$0xff] (!%p191_p9)  ;;  %v622_v45 = vld [vmem:[%s1622_s4 + $0xb0] sm:$0xff] (!%p191_p9)  ;;  %v627_v49 = vld [vmem:[%s1622_s4 + $0xd8] sm:$0xff] (!%p191_p9) }
  0x12   : > { %1012 = vmatpush1.bf16.msra.mxu1 (!%p191_p9), %v1011_v53  ;;  %v1031_v54 = vpack.c.bf16 (!%p191_p9), %v622_v45, %v620_v44  ;;  %v640_v45 = vld [vmem:[%s1622_s4 + $0x140] sm:$0xff] (!%p191_p9) }
  0x13   : > { %1014 = vmatprep.subr.bf16.mxu1 (!%p191_p9), %v1013_v59 }
  0x15   : > { %s219_s9 = scalar_select %p218_p10, %s1233_s22, 1 }
  0x16   : > { %1016 = vmatpush1.bf16.msra.mxu1 %v1015_v2 }
  0x17   : > { %s1073_s10 = smul.u32 264, %s219_s9  ;;  %s836_s9 = sshll.u32 %s215_s8, 1 }
  0x18   : > { %s217_s11 = scalar_lea.vmem [#allocation2], %s836_s9 }
  0x19   : > { %s1271_s13 = scalar_lea.vmem %s1618_s0, %s1073_s10  ;;  %s844_s10 = sshll.u32 %s1233_s22, 5 }
  0x1a   : > { %v846_v3 = vld [vmem:[%s1271_s13] sm:$0xff]   ;;  %v977_v4 = vld [vmem:[%s1271_s13 + $0x8] sm:$0xff]   ;;  %v978_v8 = vld [vmem:[%s1271_s13 + $0x10] sm:$0xff]   ;;  %s773_s12 = sshll.u32 %s217_s11, 4  ;;  %s1576_s16 = scalar_lea.hbm %s1623_s5, %s844_s10  ;;  %s1578_s12 = int_to_ptr.vmem [resolvable:$true] %s773_s12 }
  0x1b   : > { %v847_v5 = vunpack.c.l.bf16 %v846_v3  ;;  %v848_v6 = vunpack.c.h.bf16 %v846_v3  ;;  %v851_v7 = vunpack.c.l.bf16 %v977_v4  ;;  %v852_v9 = vunpack.c.h.bf16 %v977_v4  ;;  %v979_v13 = vld [vmem:[%s1271_s13 + $0x18] sm:$0xff]   ;;  %v980_v21 = vld [vmem:[%s1271_s13 + $0x20] sm:$0xff]   ;;  %v981_v28 = vld [vmem:[%s1271_s13 + $0x28] sm:$0xff]   ;;  %s1115_s23 = scalar_lea.vmem %s1578_s12, 32  ;;  %s1181_s22 = smov [#allocation2]  }
  0x1c   : > { %v855_v10 = vunpack.c.l.bf16 %v978_v8  ;;  %v856_v16 = vunpack.c.h.bf16 %v978_v8  ;;  %v859_v19 = vunpack.c.l.bf16 %v979_v13  ;;  %v860_v23 = vunpack.c.h.bf16 %v979_v13  ;;  %v982_v35 = vld [vmem:[%s1271_s13 + $0x30] sm:$0xff]   ;;  %v983_v41 = vld [vmem:[%s1271_s13 + $0x38] sm:$0xff]   ;;  %v984_v62 = vld [vmem:[%s1271_s13 + $0x40] sm:$0xff]   ;;  %p1116_p11 = scmp.ne.s32.totalorder %s1578_s12, %s1115_s23  ;;  %s1119_s25 = sshll.u32 %s1181_s22, 4  ;;  %s1120_s25 = int_to_ptr.vmem [resolvable:$false] %s1119_s25 }
  0x1d   : > { %v356_v11 = vsel %vm355_vm0, %v847_v5, 0.0  ;;  %v357_v12 = vsel %vm355_vm0, %v848_v6, 0.0  ;;  %v359_v15 = vsel %vm355_vm0, %v851_v7, 0.0  ;;  %v361_v17 = vsel %vm355_vm0, %v852_v9, 0.0  ;;  %v608_v5 = vld [vmem:[%s1622_s4 + $0x40] sm:$0xff]  ;;  %v610_v6 = vld [vmem:[%s1622_s4 + $0x50] sm:$0xff]  ;;  %p1122_p0 = scmp.lt.s32.totalorder %s1578_s12, %s1120_s25 }
  0x1e   : > { %v358_v14 = vadd.f32 %v357_v12, %v356_v11  ;;  %v363_v20 = vsel %vm355_vm0, %v855_v10, 0.0  ;;  %v365_v24 = vsel %vm355_vm0, %v856_v16, 0.0  ;;  %v863_v26 = vunpack.c.l.bf16 %v980_v21  ;;  %v613_v9 = vld [vmem:[%s1622_s4 + $0x68] sm:$0xff]  ;;  %v615_v10 = vld [vmem:[%s1622_s4 + $0x78] sm:$0xff]  ;;  %v988_v50 = vld [vmem:[%s1271_s13 + $0x60] sm:$0xff]   ;;  %p1117_p12 = pnand %p1116_p11, %p1250_p5  ;;  %s1121_s26 = scalar_lea.vmem %s1120_s25, 64 }
  0x1f   : > { %v367_v27 = vsel %vm355_vm0, %v859_v19, 0.0  ;;  %v864_v30 = vunpack.c.h.bf16 %v980_v21  ;;  %v369_v31 = vsel %vm355_vm0, %v860_v23, 0.0  ;;  %v867_v33 = vunpack.c.l.bf16 %v981_v28  ;;  %v985_v11 = vld [vmem:[%s1271_s13 + $0x48] sm:$0xff]   ;;  %v614_v19 = vld [vmem:[%s1622_s4 + $0x70] sm:$0xff]  ;;  %v619_v23 = vld [vmem:[%s1622_s4 + $0x98] sm:$0xff]  ;;  %p1123_p1 = scmp.lt.s32.totalorder %s1121_s26, %s1115_s23 }
  0x20   : > { %v360_v18 = vadd.f32 %v359_v15, %v358_v14  ;;  %v371_v34 = vsel %vm355_vm0, %v863_v26, 0.0  ;;  %v868_v37 = vunpack.c.h.bf16 %v981_v28  ;;  %v871_v40 = vunpack.c.l.bf16 %v982_v35  ;;  %p1118_p13 = pneg %p1117_p12 }
  0x21   : > { %v373_v38 = vsel %vm355_vm0, %v864_v30, 0.0  ;;  %v375_v42 = vsel %vm355_vm0, %v867_v33, 0.0  ;;  %v872_v47 = vunpack.c.h.bf16 %v982_v35  ;;  %v875_v57 = vunpack.c.l.bf16 %v983_v41  ;;  %v621_v35 = vld [vmem:[%s1622_s4 + $0xa8] sm:$0xff]  ;;  %p1124_p2 = por %p1123_p1, %p1122_p0 }
  0x22   : > { %v362_v22 = vadd.f32 %v361_v17, %v360_v18  ;;  %v377_v48 = vsel %vm355_vm0, %v868_v37, 0.0  ;;  %v379_v58 = vsel %vm355_vm0, %v871_v40, 0.0  ;;  %v876_v0 = vunpack.c.h.bf16 %v983_v41  ;;  %v612_v18 = vld [vmem:[%s1622_s4 + $0x60] sm:$0xff]  ;;  %v987_v37 = vld [vmem:[%s1271_s13 + $0x58] sm:$0xff]  }
  0x23   : > { %v381_v1 = vsel %vm355_vm0, %v872_v47, 0.0  ;;  %v1017_v4 = vpack.c.bf16 %v611_v61, %v609_v60  ;;  %v879_v7 = vunpack.c.l.bf16 %v984_v62  ;;  %v383_v8 = vsel %vm355_vm0, %v875_v57, 0.0  ;;  %v624_v57 = vld [vmem:[%s1622_s4 + $0xc0] sm:$0xff]  ;;  %v629_v61 = vld [vmem:[%s1622_s4 + $0xe8] sm:$0xff]  ;;  %p1125_p3 = pnand %p1124_p2, %p1118_p13 }
  0x24   : > { %v364_v25 = vadd.f32 %v363_v20, %v362_v22  ;;  %v880_v13 = vunpack.c.h.bf16 %v984_v62  ;;  %v385_v14 = vsel %vm355_vm0, %v876_v0, 0.0  ;;  %v1019_v15 = vpack.c.bf16 %v610_v6, %v608_v5  ;;  %v617_v22 = vld [vmem:[%s1622_s4 + $0x88] sm:$0xff]  ;;  %v631_v62 = vld [vmem:[%s1622_s4 + $0xf8] sm:$0xff]  ;;  %v628_v6 = vld [vmem:[%s1622_s4 + $0xe0] sm:$0xff] }
  0x25   : > { %1018 = vmatprep.subr.bf16.mxu1 %v1017_v4  ;;  %v1021_v17 = vpack.c.bf16 %v615_v10, %v613_v9  ;;  %v883_v20 = vunpack.c.l.bf16 %v985_v11  ;;  %v387_v21 = vsel %vm355_vm0, %v879_v7, 0.0  ;;  %v884_v26 = vunpack.c.h.bf16 %v985_v11  ;;  %v630_v7 = vld [vmem:[%s1622_s4 + $0xf0] sm:$0xff]  ;;  %v633_v10 = vld [vmem:[%s1622_s4 + $0x108] sm:$0xff]  ;;  %v635_v11 = vld [vmem:[%s1622_s4 + $0x118] sm:$0xff] }
  0x26   : > { %v366_v29 = vadd.f32 %v365_v24, %v364_v25  ;;  %v986_v24 = vld [vmem:[%s1271_s13 + $0x50] sm:$0xff]   ;;  %1020 = vmatpush1.bf16.msra.mxu1 %v1019_v15  ;;  %v1023_v28 = vpack.c.bf16 %v614_v19, %v612_v18  ;;  %v1025_v30 = vpack.c.bf16 %v619_v23, %v617_v22  ;;  %v891_v46 = vunpack.c.l.bf16 %v987_v37  ;;  %v632_v19 = vld [vmem:[%s1622_s4 + $0x100] sm:$0xff]  ;;  %v637_v23 = vld [vmem:[%s1622_s4 + $0x128] sm:$0xff] }
  0x27   : > { %1022 = vmatprep.subr.bf16.mxu1 %v1021_v17  ;;  %v887_v33 = vunpack.c.l.bf16 %v986_v24  ;;  %v393_v40 = vsel %vm355_vm0, %v884_v26, 0.0  ;;  %v892_v52 = vunpack.c.h.bf16 %v987_v37  ;;  %v895_v59 = vunpack.c.l.bf16 %v988_v50  ;;  %v643_v37 = vld [vmem:[%s1622_s4 + $0x158] sm:$0xff] }
  0x28   : > { %v368_v32 = vadd.f32 %v367_v27, %v366_v29  ;;  %v389_v27 = vsel %vm355_vm0, %v880_v13, 0.0  ;;  %v399_v60 = vsel %vm355_vm0, %v891_v46, 0.0  ;;  %v1037_v5 = vpack.c.bf16 %v631_v62, %v629_v61  ;;  %v642_v46 = vld [vmem:[%s1622_s4 + $0x150] sm:$0xff]  ;;  %v649_v62 = vld [vmem:[%s1622_s4 + $0x188] sm:$0xff] }
  0x29   : > { %v395_v47 = vsel %vm355_vm0, %v887_v33, 0.0  ;;  %v401_v2 = vsel %vm355_vm0, %v892_v52, 0.0  ;;  %v403_v9 = vsel %vm355_vm0, %v895_v59, 0.0  ;;  %v1041_v18 = vpack.c.bf16 %v635_v11, %v633_v10  ;;  %v638_v33 = vld [vmem:[%s1622_s4 + $0x130] sm:$0xff]  ;;  %v653_v11 = vld [vmem:[%s1622_s4 + $0x1a8] sm:$0xff] }
  0x2a   : > { %v370_v36 = vadd.f32 %v369_v31, %v368_v32  ;;  %v616_v31 = vld [vmem:[%s1622_s4 + $0x80] sm:$0xff]  ;;  %v618_v32 = vld [vmem:[%s1622_s4 + $0x90] sm:$0xff]  ;;  %1024 = vmatpush1.bf16.msra.mxu1 %v1023_v28 }
  0x2b   : > { %v1027_v41 = vpack.c.bf16 %v618_v32, %v616_v31  ;;  %1026 = vmatprep.subr.bf16.mxu1 %v1025_v30  ;;  %v636_v32 = vld [vmem:[%s1622_s4 + $0x120] sm:$0xff]  ;;  %v646_v59 = vld [vmem:[%s1622_s4 + $0x170] sm:$0xff] }
  0x2c   : > { %v372_v39 = vadd.f32 %v371_v34, %v370_v36  ;;  %v391_v34 = vsel %vm355_vm0, %v883_v20, 0.0  ;;  %v623_v36 = vld [vmem:[%s1622_s4 + $0xb8] sm:$0xff]  ;;  %v634_v20 = vld [vmem:[%s1622_s4 + $0x110] sm:$0xff] }
  0x2e   : > { %v374_v43 = vadd.f32 %v373_v38, %v372_v39  ;;  %v888_v39 = vunpack.c.h.bf16 %v986_v24  ;;  %1028 = vmatpush1.bf16.msra.mxu1 %v1027_v41  ;;  %v639_v24 = vld [vmem:[%s1622_s4 + $0x138] sm:$0xff] }
  0x2f   : > { %v1045_v31 = vpack.c.bf16 %v639_v24, %v637_v23  ;;  %v996_v24 = vld [vmem:[%s1271_s13 + $0xa0] sm:$0xff]  }
  0x30   : > { %v376_v51 = vadd.f32 %v375_v42, %v374_v43  ;;  %v1029_v43 = vpack.c.bf16 %v623_v36, %v621_v35  ;;  %v397_v53 = vsel %vm355_vm0, %v888_v39, 0.0  ;;  %v641_v36 = vld [vmem:[%s1622_s4 + $0x148] sm:$0xff] }
  0x31   : > { %v1049_v44 = vpack.c.bf16 %v643_v37, %v641_v36 }
  0x32   : > { %v378_v63 = vadd.f32 %v377_v48, %v376_v51  ;;  %v625_v48 = vld [vmem:[%s1622_s4 + $0xc8] sm:$0xff]  ;;  %1030 = vmatprep.subr.bf16.mxu1 %v1029_v43 }
  0x33   : > { %v1033_v56 = vpack.c.bf16 %v627_v49, %v625_v48  ;;  %1032 = vmatpush1.bf16.msra.mxu1 %v1031_v54  ;;  %v645_v49 = vld [vmem:[%s1622_s4 + $0x168] sm:$0xff] }
  0x34   : > { %v380_v3 = vadd.f32 %v379_v58, %v378_v63  ;;  %v626_v58 = vld [vmem:[%s1622_s4 + $0xd0] sm:$0xff]  ;;  %v989_v63 = vld [vmem:[%s1271_s13 + $0x68] sm:$0xff]  }
  0x35   : > { %1034 = vmatprep.subr.bf16.mxu1 %v1033_v56 }
  0x36   : > { %v382_v12 = vadd.f32 %v381_v1, %v380_v3  ;;  %v896_v1 = vunpack.c.h.bf16 %v988_v50  ;;  %v1035_v3 = vpack.c.bf16 %v626_v58, %v624_v57  ;;  %v647_v50 = vld [vmem:[%s1622_s4 + $0x178] sm:$0xff]  ;;  %v644_v58 = vld [vmem:[%s1622_s4 + $0x160] sm:$0xff] }
  0x37   : > { %v1053_v57 = vpack.c.bf16 %v647_v50, %v645_v49 }
  0x38   : > { %v384_v16 = vadd.f32 %v383_v8, %v382_v12  ;;  %v899_v8 = vunpack.c.l.bf16 %v989_v63  ;;  %v990_v12 = vld [vmem:[%s1271_s13 + $0x70] sm:$0xff]   ;;  %v405_v15 = vsel %vm355_vm0, %v896_v1, 0.0  ;;  %1036 = vmatpush1.bf16.msra.mxu1 %v1035_v3 }
  0x39   : > { %1038 = vmatprep.subr.bf16.mxu1 %v1037_v5 }
  0x3a   : > { %v386_v25 = vadd.f32 %v385_v14, %v384_v16  ;;  %v900_v14 = vunpack.c.h.bf16 %v989_v63  ;;  %v1039_v16 = vpack.c.bf16 %v630_v7, %v628_v6  ;;  %v407_v22 = vsel %vm355_vm0, %v899_v8, 0.0  ;;  %v651_v63 = vld [vmem:[%s1622_s4 + $0x198] sm:$0xff]  ;;  %v648_v7 = vld [vmem:[%s1622_s4 + $0x180] sm:$0xff]  ;;  %v650_v8 = vld [vmem:[%s1622_s4 + $0x190] sm:$0xff] }
  0x3b   : > { %v1057_v6 = vpack.c.bf16 %v651_v63, %v649_v62 }
  0x3c   : > { %v388_v29 = vadd.f32 %v387_v21, %v386_v25  ;;  %v903_v21 = vunpack.c.l.bf16 %v990_v12  ;;  %v991_v25 = vld [vmem:[%s1271_s13 + $0x78] sm:$0xff]   ;;  %v409_v28 = vsel %vm355_vm0, %v900_v14, 0.0  ;;  %1040 = vmatpush1.bf16.msra.mxu1 %v1039_v16 }
  0x3d   : > { %1042 = vmatprep.subr.bf16.mxu1 %v1041_v18 }
  0x3e   : > { %v390_v38 = vadd.f32 %v389_v27, %v388_v29  ;;  %v904_v27 = vunpack.c.h.bf16 %v990_v12  ;;  %v1043_v29 = vpack.c.bf16 %v634_v20, %v632_v19  ;;  %v411_v35 = vsel %vm355_vm0, %v903_v21, 0.0  ;;  %v655_v12 = vld [vmem:[%s1622_s4 + $0x1b8] sm:$0xff]  ;;  %v652_v20 = vld [vmem:[%s1622_s4 + $0x1a0] sm:$0xff]  ;;  %v654_v21 = vld [vmem:[%s1622_s4 + $0x1b0] sm:$0xff] }
  0x3f   : > { %v1061_v19 = vpack.c.bf16 %v655_v12, %v653_v11 }
  0x40   : > { %v392_v42 = vadd.f32 %v391_v34, %v390_v38  ;;  %v907_v34 = vunpack.c.l.bf16 %v991_v25  ;;  %v992_v38 = vld [vmem:[%s1271_s13 + $0x80] sm:$0xff]   ;;  %v413_v41 = vsel %vm355_vm0, %v904_v27, 0.0  ;;  %1044 = vmatpush1.bf16.msra.mxu1 %v1043_v29 }
  0x41   : > { %1046 = vmatprep.subr.bf16.mxu1 %v1045_v31 }
  0x42   : > { %v394_v51 = vadd.f32 %v393_v40, %v392_v42  ;;  %v908_v40 = vunpack.c.h.bf16 %v991_v25  ;;  %v1047_v42 = vpack.c.bf16 %v638_v33, %v636_v32  ;;  %v415_v48 = vsel %vm355_vm0, %v907_v34, 0.0  ;;  %v997_v32 = vld [vmem:[%s1271_s13 + $0xa8] sm:$0xff]  }
  0x43   : > { %v928_v34 = vunpack.c.h.bf16 %v996_v24  ;;  %v931_v37 = vunpack.c.l.bf16 %v997_v32 }
  0x44   : > { %v396_v55 = vadd.f32 %v395_v47, %v394_v51  ;;  %v911_v47 = vunpack.c.l.bf16 %v992_v38  ;;  %v993_v51 = vld [vmem:[%s1271_s13 + $0x88] sm:$0xff]   ;;  %v417_v54 = vsel %vm355_vm0, %v908_v40, 0.0  ;;  %1048 = vmatpush1.bf16.msra.mxu1 %v1047_v42 }
  0x45   : > { %1050 = vmatprep.subr.bf16.mxu1 %v1049_v44  ;;  %v437_v42 = vsel %vm355_vm0, %v928_v34, 0.0 }
  0x46   : > { %v398_v0 = vadd.f32 %v397_v53, %v396_v55  ;;  %v912_v53 = vunpack.c.h.bf16 %v992_v38  ;;  %v1051_v55 = vpack.c.bf16 %v642_v46, %v640_v45  ;;  %v419_v61 = vsel %vm355_vm0, %v911_v47, 0.0  ;;  %v999_v46 = vld [vmem:[%s1271_s13 + $0xb8] sm:$0xff]  }
  0x47   : > { %v439_v45 = vsel %vm355_vm0, %v931_v37, 0.0 }
  0x48   : > { %v400_v4 = vadd.f32 %v399_v60, %v398_v0  ;;  %v915_v60 = vunpack.c.l.bf16 %v993_v51  ;;  %v994_v0 = vld [vmem:[%s1271_s13 + $0x90] sm:$0xff]   ;;  %v421_v3 = vsel %vm355_vm0, %v912_v53, 0.0  ;;  %1052 = vmatpush1.bf16.msra.mxu1 %v1051_v55  ;;  %v1000_v53 = vld [vmem:[%s1271_s13 + $0xc0] sm:$0xff]   ;;  %v940_v55 = vunpack.c.h.bf16 %v999_v46 }
  0x49   : > { %1054 = vmatprep.subr.bf16.mxu1 %v1053_v57  ;;  %v944_v62 = vunpack.c.h.bf16 %v1000_v53 }
  0x4a   : > { %v402_v13 = vadd.f32 %v401_v2, %v400_v4  ;;  %v916_v2 = vunpack.c.h.bf16 %v993_v51  ;;  %v1055_v4 = vpack.c.bf16 %v646_v59, %v644_v58  ;;  %v423_v10 = vsel %vm355_vm0, %v915_v60, 0.0  ;;  %v1001_v60 = vld [vmem:[%s1271_s13 + $0xc8] sm:$0xff]  }
  0x4b   : > { %v939_v51 = vunpack.c.l.bf16 %v999_v46  ;;  %v943_v58 = vunpack.c.l.bf16 %v1000_v53  ;;  %v449_v63 = vsel %vm355_vm0, %v940_v55, 0.0 }
  0x4c   : > { %v404_v17 = vadd.f32 %v403_v9, %v402_v13  ;;  %v919_v9 = vunpack.c.l.bf16 %v994_v0  ;;  %v995_v13 = vld [vmem:[%s1271_s13 + $0x98] sm:$0xff]   ;;  %v425_v16 = vsel %vm355_vm0, %v916_v2, 0.0  ;;  %1056 = vmatpush1.bf16.msra.mxu1 %v1055_v4 }
  0x4d   : > { %1058 = vmatprep.subr.bf16.mxu1 %v1057_v6  ;;  %v447_v59 = vsel %vm355_vm0, %v939_v51, 0.0  ;;  %v451_v2 = vsel %vm355_vm0, %v943_v58, 0.0  ;;  %v453_v6 = vsel %vm355_vm0, %v944_v62, 0.0 }
  0x4e   : > { %v406_v26 = vadd.f32 %v405_v15, %v404_v17  ;;  %v920_v15 = vunpack.c.h.bf16 %v994_v0  ;;  %v1059_v17 = vpack.c.bf16 %v650_v8, %v648_v7  ;;  %v427_v23 = vsel %vm355_vm0, %v919_v9, 0.0 }
  0x50   : > { %v408_v30 = vadd.f32 %v407_v22, %v406_v26  ;;  %v923_v22 = vunpack.c.l.bf16 %v995_v13  ;;  %v924_v26 = vunpack.c.h.bf16 %v995_v13  ;;  %v429_v27 = vsel %vm355_vm0, %v920_v15, 0.0  ;;  %1060 = vmatpush1.bf16.msra.mxu1 %v1059_v17  ;;  %v1004_v17 = vld [vmem:[%s1271_s13 + $0xe0] sm:$0xff]  }
  0x51   : > { %1062 = vmatprep.subr.bf16.mxu1 %v1061_v19 }
  0x52   : > { %v410_v39 = vadd.f32 %v409_v28, %v408_v30  ;;  %v1063_v28 = vpack.c.bf16 %v654_v21, %v652_v20  ;;  %v927_v30 = vunpack.c.l.bf16 %v996_v24  ;;  %v431_v31 = vsel %vm355_vm0, %v923_v22, 0.0  ;;  %v1005_v24 = vld [vmem:[%s1271_s13 + $0xe8] sm:$0xff]  }
  0x53   : > { %v959_v22 = vunpack.c.l.bf16 %v1004_v17 }
  0x54   : > { %v412_v43 = vadd.f32 %v411_v35, %v410_v39  ;;  %v433_v35 = vsel %vm355_vm0, %v924_v26, 0.0  ;;  %1064 = vmatpush1.bf16.msra.mxu1 %v1063_v28  ;;  %v435_v38 = vsel %vm355_vm0, %v927_v30, 0.0  ;;  %v998_v39 = vld [vmem:[%s1271_s13 + $0xb0] sm:$0xff]   ;;  %v960_v26 = vunpack.c.h.bf16 %v1004_v17 }
  0x55   : > { %v935_v44 = vunpack.c.l.bf16 %v998_v39  ;;  %v467_v30 = vsel %vm355_vm0, %v959_v22, 0.0 }
  0x56   : > { %v414_v52 = vadd.f32 %v413_v41, %v412_v43  ;;  %v932_v41 = vunpack.c.h.bf16 %v997_v32  ;;  %v469_v34 = vsel %vm355_vm0, %v960_v26, 0.0 }
  0x58   : > { %v416_v56 = vadd.f32 %v415_v48, %v414_v52  ;;  %v936_v48 = vunpack.c.h.bf16 %v998_v39  ;;  %v441_v49 = vsel %vm355_vm0, %v932_v41, 0.0  ;;  %v443_v52 = vsel %vm355_vm0, %v935_v44, 0.0 }
  0x5a   : > { %v418_v1 = vadd.f32 %v417_v54, %v416_v56  ;;  %v445_v56 = vsel %vm355_vm0, %v936_v48, 0.0 }
  0x5c   : > { %v420_v5 = vadd.f32 %v419_v61, %v418_v1  ;;  %v947_v1 = vunpack.c.l.bf16 %v1001_v60 }
  0x5e   : > { %v422_v14 = vadd.f32 %v421_v3, %v420_v5  ;;  %v1002_v3 = vld [vmem:[%s1271_s13 + $0xd0] sm:$0xff]   ;;  %v948_v5 = vunpack.c.h.bf16 %v1001_v60  ;;  %v455_v9 = vsel %vm355_vm0, %v947_v1, 0.0 }
  0x5f   : > { %v951_v8 = vunpack.c.l.bf16 %v1002_v3  ;;  %v952_v12 = vunpack.c.h.bf16 %v1002_v3 }
  0x60   : > { %v424_v18 = vadd.f32 %v423_v10, %v422_v14  ;;  %v1003_v10 = vld [vmem:[%s1271_s13 + $0xd8] sm:$0xff]   ;;  %v457_v13 = vsel %vm355_vm0, %v948_v5, 0.0 }
  0x61   : > { %v955_v15 = vunpack.c.l.bf16 %v1003_v10  ;;  %v956_v19 = vunpack.c.h.bf16 %v1003_v10  ;;  %v461_v20 = vsel %vm355_vm0, %v952_v12, 0.0  ;;  %v659_v5 = vld [vmem:[%s1622_s4 + $0x1d8] sm:$0xff]  ;;  %v661_v10 = vld [vmem:[%s1622_s4 + $0x1e8] sm:$0xff] }
  0x62   : > { %v426_v25 = vadd.f32 %v425_v16, %v424_v18  ;;  %v459_v16 = vsel %vm355_vm0, %v951_v8, 0.0  ;;  %v658_v8 = vld [vmem:[%s1622_s4 + $0x1d0] sm:$0xff] }
  0x64   : > { %v428_v29 = vadd.f32 %v427_v23, %v426_v25  ;;  %v463_v23 = vsel %vm355_vm0, %v955_v15, 0.0 }
  0x66   : > { %v430_v33 = vadd.f32 %v429_v27, %v428_v29  ;;  %v465_v27 = vsel %vm355_vm0, %v956_v19, 0.0  ;;  %v963_v29 = vunpack.c.l.bf16 %v1005_v24  ;;  %v570_v19 = vld [vmem:[%s1620_s2] sm:$0x3] }
  0x68   : > { %v432_v36 = vadd.f32 %v431_v31, %v430_v33  ;;  %v1006_v31 = vld [vmem:[%s1271_s13 + $0xf0] sm:$0xff]   ;;  %v964_v33 = vunpack.c.h.bf16 %v1005_v24  ;;  %v471_v37 = vsel %vm355_vm0, %v963_v29, 0.0 }
  0x6a   : > { %v434_v40 = vadd.f32 %v433_v35, %v432_v36  ;;  %v967_v36 = vunpack.c.l.bf16 %v1006_v31  ;;  %v473_v41 = vsel %vm355_vm0, %v964_v33, 0.0 }
  0x6c   : > { %v436_v43 = vadd.f32 %v435_v38, %v434_v40  ;;  %v1007_v38 = vld [vmem:[%s1271_s13 + $0xf8] sm:$0xff]   ;;  %v968_v40 = vunpack.c.h.bf16 %v1006_v31  ;;  %v475_v44 = vsel %vm355_vm0, %v967_v36, 0.0 }
  0x6e   : > { %v438_v47 = vadd.f32 %v437_v42, %v436_v43  ;;  %v971_v43 = vunpack.c.l.bf16 %v1007_v38  ;;  %v477_v48 = vsel %vm355_vm0, %v968_v40, 0.0 }
  0x70   : > { %v440_v50 = vadd.f32 %v439_v45, %v438_v47  ;;  %v1008_v45 = vld [vmem:[%s1271_s13 + $0x100] sm:$0xff]   ;;  %v972_v47 = vunpack.c.h.bf16 %v1007_v38  ;;  %v479_v51 = vsel %vm355_vm0, %v971_v43, 0.0 }
  0x71   : > { %v976_v53 = vunpack.c.h.bf16 %v1008_v45 }
  0x72   : > { %v442_v54 = vadd.f32 %v441_v49, %v440_v50  ;;  %v975_v50 = vunpack.c.l.bf16 %v1008_v45 }
  0x73   : > { %v485_v58 = vsel %vm355_vm0, %v976_v53, 0.0 }
  0x74   : > { %v444_v57 = vadd.f32 %v443_v52, %v442_v54  ;;  %v481_v54 = vsel %vm355_vm0, %v972_v47, 0.0 }
  0x76   : > { %v446_v61 = vadd.f32 %v445_v56, %v444_v57  ;;  %v483_v56 = vsel %vm355_vm0, %v975_v50, 0.0 }
  0x78   : > { %v448_v0 = vadd.f32 %v447_v59, %v446_v61 }
  0x7a   : > { %v450_v4 = vadd.f32 %v449_v63, %v448_v0 }
  0x7c   : > { %v452_v7 = vadd.f32 %v451_v2, %v450_v4  ;;  %v657_v4 = vld [vmem:[%s1622_s4 + $0x1c8] sm:$0xff] }
  0x7e   : > { %v454_v11 = vadd.f32 %v453_v6, %v452_v7  ;;  %v1065_v6 = vpack.c.bf16 %v659_v5, %v657_v4  ;;  %v656_v7 = vld [vmem:[%s1622_s4 + $0x1c0] sm:$0xff] }
  0x80   : > { %v456_v14 = vadd.f32 %v455_v9, %v454_v11  ;;  %v1067_v9 = vpack.c.bf16 %v658_v8, %v656_v7  ;;  %1066 = vmatprep.subr.bf16.mxu1 %v1065_v6  ;;  %v663_v11 = vld [vmem:[%s1622_s4 + $0x1f8] sm:$0xff] }
  0x81   : > { %v1069_v12 = vpack.c.bf16 %v663_v11, %v661_v10 }
  0x82   : > { %v458_v18 = vadd.f32 %v457_v13, %v456_v14  ;;  %1068 = vmatpush1.bf16.msra.mxu1 %v1067_v9  ;;  %v660_v13 = vld [vmem:[%s1622_s4 + $0x1e0] sm:$0xff]  ;;  %v662_v14 = vld [vmem:[%s1622_s4 + $0x1f0] sm:$0xff] }
  0x83   : > { %v1071_v15 = vpack.c.bf16 %v662_v14, %v660_v13  ;;  %1070 = vmatprep.subr.bf16.mxu1 %v1069_v12 }
  0x84   : > { %v460_v21 = vadd.f32 %v459_v16, %v458_v18  ;;  %v572_v16 = vlaneseq }
  0x86   : > { %v462_v25 = vadd.f32 %v461_v20, %v460_v21  ;;  %1072 = vmatpush1.bf16.msra.mxu1 %v1071_v15  ;;  %v573_v17 = vshrl.u32 %v572_v16, 7  ;;  %v584_v21 = vld [vmem:[%s1621_s3] sm:$0x3]  ;;  %vm755_vm1 = vcmp.lt.s32.totalorder %v572_v16, 256 }
  0x88   : > { %v464_v28 = vadd.f32 %v463_v23, %v462_v25  ;;  %v574_v18 = vsub.s32 0, %v573_v17  ;;  %v578_v20 = vsub.s32 1, %v573_v17 }
  0x8a   : > { %v466_v32 = vadd.f32 %v465_v27, %v464_v28  ;;  %v575_v22 = vrot.slane %v570_v19, %v574_v18  ;;  %v579_v23 = vrot.slane %v570_v19, %v578_v20  ;;  %v589_v24 = vrot.slane %v584_v21, %v574_v18 }
  0x8b   : > { %v593_v26 = vrot.slane %v584_v21, %v578_v20 }
  0x8c   : > { %v468_v35 = vadd.f32 %v467_v30, %v466_v32 }
  0x8e   : > { %v470_v39 = vadd.f32 %v469_v34, %v468_v35  ;;  %v1180_v34 = vmov 1966171168  }
  0x8f   : > { %v739_v35 = vunpack.c.l.s4 %v1180_v34 }
  0x90   : > { %v472_v42 = vadd.f32 %v471_v37, %v470_v39 }
  0x91   : > { %v740_v36 = vunpack.c.0.s8 %v739_v35 }
  0x92   : > { %v474_v46 = vadd.f32 %v473_v41, %v472_v42 }
  0x93   : > { %v743_v38 = vsub.s32 %v740_v36, %v573_v17 }
  0x94   : > { %v476_v49 = vadd.f32 %v475_v44, %v474_v46 }
  0x96   : > { %v478_v52 = vadd.f32 %v477_v48, %v476_v49 }
  0x98   : > { %v480_v55 = vadd.f32 %v479_v51, %v478_v52 }
  0x9a   : > { %v482_v57 = vadd.f32 %v481_v54, %v480_v55 }
  0x9c   : > { %v484_v59 = vadd.f32 %v483_v56, %v482_v57 }
  0x9e   : > { %v486_v60 = vadd.f32 %v485_v58, %v484_v59 }
  0xa0   : > { %v487_v61 = vrot.slane %v486_v60, 4 }
  0xa2   : > { %v488_v62 = vadd.f32 %v487_v61, %v486_v60 }
  0xa4   : > { %v489_v63 = vrot.slane %v488_v62, 2 }
  0xa6   : > { %v490_v0 = vadd.f32 %v489_v63, %v488_v62 }
  0xa8   : > { %v491_v1 = vrot.slane %v490_v0, 1 }
  0xaa   : > { %v492_v2 = vadd.f32 %v491_v1, %v490_v0 }
  0xac   : > { %v493_v3 = vmul.f32 0.00390625, %v492_v2 }
  0xae   : > { %838 = vmatmul.mubr.msk.f32.vlgmr.msra.gmra.mrb[0].mxu0 %vm355_vm0, %v493_v3 }
 0x181   : > { %v565_v25 = vpop.f32.mrb[0].mxu0 }
 0x182   : > { %v582_v27 = vmul.f32 %v575_v22, %v565_v25  ;;  %v567_v28 = vpop.f32.mrb[1].mxu0 }
 0x183   : > { %v583_v29 = vmul.f32 %v579_v23, %v567_v28 }
 0x184   : > { %v596_v30 = vadd.f32 %v589_v24, %v582_v27 }
 0x185   : > { %v597_v31 = vadd.f32 %v593_v26, %v583_v29 }
 0x186   : > { %v598_v33 = vmax.f32 %v596_v30, 0.0 }
 0x187   : > { %v599_v32 = vmax.f32 %v597_v31, 0.0 }
 0x189   : > { %728 = vmatprep.mubr.f32.mxu1 %v599_v32 }
 0x18a   : > { %729 = vmatmul.mubr.f32.vlgmr.msra.gmra.mrb[0].mxu1 %v598_v33 }
 0x25d   : > { %v730_v37 = vpop.f32.mrb[0].mxu1 }
 0x25e   : > { %v732_v39 = vpop.f32.mrb[1].mxu1 }
 0x25f   : > { %v737_v40 = vcombine.low %v730_v37, %v732_v39 }
 0x261   : > { %v744_v41 = vrot.slane %v737_v40, %v743_v38 }
 0x263   : > { %v751_v42 = vrot.slane %v744_v41, %v743_v38 }
 0x265   : > { %757 = vst.msk [vmem:[%s217_s11] sm:$0x3] %vm755_vm1, %v751_v42 }
 0x266   : > { %1128 = shalt.err (!%p1125_p3)
}
 0x267   : > { %s1129_s13 = scalar_lea.hbm %s1576_s16, 32  ;;  %s1133_s7 = scalar_lea.hbm %s1623_s5, 64 }
 0x268   : > { %p1130_p4 = scmp.ne.s32.totalorder %s1576_s16, %s1129_s13  ;;  %p1134_p9 = scmp.lt.u32.totalorder %s1576_s16, %s1623_s5 }
 0x269   : > { %p1135_p10 = scmp.lt.u32.totalorder %s1133_s7, %s1129_s13  ;;  %p1137_p12 = scmp.lt.u32.totalorder %s1129_s13, %s1576_s16 }
 0x26a   : > { %p1131_p7 = pnand %p1130_p4, %p1250_p5 }
 0x26b   : > { %p1136_p11 = por %p1135_p10, %p1134_p9 }
 0x26c   : > { %p1132_p8 = pneg %p1131_p7 }
 0x26d   : > { %p1138_p13 = por %p1137_p12, %p1136_p11 }
 0x26f   : > { %p1139_p0 = pnand %p1138_p13, %p1132_p8 }
 0x271   : > { %1142 = shalt.err (!%p1139_p0)
}
 0x272   : > { %1074 = dma.vmem_to_hbm [thread:$0]  (%p1250_p5), %s1578_s12, 32, %s1576_s16, %s759_s17  }
 0x273 PF: > { %p1080_p1 = scmp.ge.s32.totalorder %s1177_s21, 2  ;;  %s785_s10 = sand.u32 1, %s1165_s18  }
 0x274   : > { %s786_s11 = scalar_lea.sflag [#allocation3], %s785_s10 }
 0x275   : > { %p1077_p2 = pnand %p1080_p1, %p1254_p6 }
 0x277   : > { %1160 = dma.done.wait (!%p1077_p2), %s786_s11, 32  }
 0x278   : > { %1162 = vsyncadd (!%p1077_p2), %s786_s11, 4294967264  ;;  %p15_p3 = scmp.ge.s32.totalorder %s1237_s24, 4   ;;  %s1626_s18 = smov %s1169_s19 }
 0x279   : > { %s1627_s19 = smov %s1173_s20  ;;  %s1628_s20 = smov %s1248_s27 }
 0x27a   : > { %s1629_s21 = smov %s1237_s24  ;;  %17 = sbr.rel (!%p15_p3) target bundleno = 3 (0x3), region = 75 }
 0x281   :  { %791 = vsyncpa [#allocation3], 1 }
 0x282   :  { %793 = vsyncpa [#allocation3 + $0x1], 1 }

</bundles_post_ra>
